<compile_context>
chip_gen: v7x
topology: tpu7x:2x2x1
jax: 0.10.0
libtpu: 0.0.40
codegen_flags: <defaults>
</compile_context>

<pallas_src>
import functools

import jax
import jax.numpy as jnp
from jax.experimental import pallas as pl
from jax.experimental.pallas import tpu as pltpu


def _round_up(n, m):
    return ((n + m - 1) // m) * m


def _sigmoid(x):
    # exp + approximate reciprocal both lower to the EUP (free slot here);
    # all math stays f32.
    return pl.reciprocal(1.0 + jnp.exp(-x), approx=True)


def _shifted(x, shift):
    """y[:, t] = x[:, clamp(t - shift, 0, S-1)]  (replicate-padded shift).

    x: (nper, S, C); `shift` is a static Python int with |shift| < S.
    Pure sublane slice + concat (XLU work only), applied per section, so no
    cross-section leakage and no host-side halo is needed.
    """
    if shift == 0:
        return x
    s = x.shape[1]
    if shift > 0:
        edge = x[:, 0:1, :]
        pieces = [edge] * shift + [x[:, : s - shift, :]]
    else:
        k = -shift
        edge = x[:, s - 1:s, :]
        pieces = [x[:, k:, :]] + [edge] * k
    return jnp.concatenate(pieces, axis=1)


def _pass_cell_kernel(comb_ref, w1t_ref, b1_ref, wxh_ref, wo_ref, bc_ref,
                      out_ref):
    """Fused linear + sigmoid + Conv1d(replicate) + gates for nper sections.

    comb_ref: (nper, S_pad, Din+H)  bf16   [x, h] per section
    w1t_ref:  (Din+H, H)            bf16   linear weight, transposed
    b1_ref:   (1, H)                f32
    wxh_ref:  (K, Din+H, 3H)        bf16   conv weight, [x, h] input channels
    wo_ref:   (K, H, 3H)            bf16   conv weight, o input channels
    bc_ref:   (1, 3H)               f32
    out_ref:  (nper, S_pad, 2H)     bf16   [y | h_new]
    Conv output channels are pre-permuted to [o_gate, x_gate, h_gate].
    """
    nper, s_pad, c1 = comb_ref.shape
    h_dim = w1t_ref.shape[1]
    k_taps = wxh_ref.shape[0]
    pad = k_taps // 2
    rows = nper * s_pad

    comb3 = comb_ref[...]                                 # (nper, S_pad, C1)
    comb2d = comb3.reshape(rows, c1)                      # tile-aligned merge

    # linear + sigmoid -> o  (edge-padded rows reproduce replicate padding)
    lin = jnp.dot(comb2d, w1t_ref[...], preferred_element_type=jnp.float32)
    o_f32 = _sigmoid(lin + b1_ref[...])                   # (rows, H) f32
    o3 = o_f32.astype(jnp.bfloat16).reshape(nper, s_pad, h_dim)

    # Conv1d (replicate padding) as K per-section shifted matmuls; the conv
    # weight is split per input group so no wide lane concat is ever built.
    acc = None
    for k in range(k_taps):
        shift = pad - k
        xh_k = _shifted(comb3, shift).reshape(rows, c1)
        o_k = _shifted(o3, shift).reshape(rows, h_dim)
        term = (jnp.dot(xh_k, wxh_ref[k], preferred_element_type=jnp.float32)
                + jnp.dot(o_k, wo_ref[k], preferred_element_type=jnp.float32))
        acc = term if acc is None else acc + term

    gates = _sigmoid(acc + bc_ref[...])                   # (rows, 3H), [o,x,h]
    og = gates[:, :h_dim]                                 # y, lanes [0, H)
    h_new = og + gates[:, h_dim:2 * h_dim] + gates[:, 2 * h_dim:]

    out2d = jnp.concatenate([og, h_new], axis=1).astype(out_ref.dtype)
    out_ref[...] = out2d.reshape(nper, s_pad, 2 * h_dim)


def prepare_params(params, *, input_dim, hidden_dim, kernel_size):
    """One-time weight re-layout (transpose / split / reorder / bf16 cast)."""
    assert kernel_size % 2 == 1, "replicate-pad scheme assumes odd kernel_size"
    H, Din = hidden_dim, input_dim
    w1 = jnp.asarray(params["w1"], jnp.float32)           # (H, Din+H)
    b1 = jnp.asarray(params["b1"], jnp.float32)           # (H,)
    wc = jnp.asarray(params["wc"], jnp.float32)           # (3H, Din+2H, K)
    bc = jnp.asarray(params["bc"], jnp.float32)           # (3H,)

    # reorder conv OUTPUT channels [x, o, h] -> [o, x, h] so y = o_gate lands
    # in lanes [0, H) of the kernel's gate slab.
    perm = jnp.concatenate(
        [jnp.arange(H, 2 * H), jnp.arange(0, H), jnp.arange(2 * H, 3 * H)])
    wc = wc[perm]
    bc = bc[perm]

    wc_t = jnp.transpose(wc, (2, 1, 0))                   # (K, Din+2H, 3H)
    # comb2 input channel layout is [x (Din), o (H), h (H)]
    wxh = jnp.concatenate([wc_t[:, :Din, :], wc_t[:, Din + H:, :]], axis=1)
    wo = wc_t[:, Din:Din + H, :]

    return {
        "w1t": jnp.transpose(w1).astype(jnp.bfloat16),    # (Din+H, H)
        "b1": b1.reshape(1, H),
        "wxh": wxh.astype(jnp.bfloat16),                  # (K, Din+H, 3H)
        "wo": wo.astype(jnp.bfloat16),                    # (K, H, 3H)
        "bc": bc.reshape(1, 3 * H),
    }


@functools.partial(jax.jit,
                   static_argnames=("hidden_dim", "kernel_size", "block_rows"))
def _forward(x, h, prep, *, hidden_dim, kernel_size, block_rows):
    N, Din, S = x.shape
    H = hidden_dim
    C1 = Din + H

    # host prologue: one fused transpose + concat + cast (+ small edge pad)
    x_nsc = jnp.transpose(x, (0, 2, 1))
    h_nsc = jnp.transpose(h, (0, 2, 1))
    comb = jnp.concatenate([x_nsc, h_nsc], axis=2).astype(jnp.bfloat16)

    # pad each section to a multiple of 16 rows with edge rows (bf16 sublane
    # packing); the extra rows reproduce replicate padding and their outputs
    # are discarded below.
    S_pad = _round_up(S, 16)
    if S_pad != S:
        comb = jnp.pad(comb, ((0, 0), (0, S_pad - S), (0, 0)), mode="edge")

    # sections per block: target ~block_rows rows per grid step, but keep the
    # grid at >= 2 blocks (when N >= 2) so the "parallel" axis can shard
    # across v7x's two TensorCores.
    nper = max(1, min(block_rows // S_pad, N))
    nb = pl.cdiv(N, nper)
    if nb < 2 and N >= 2:
        nper = pl.cdiv(N, 2)
        nb = pl.cdiv(N, nper)
    N_pad = nb * nper
    if N_pad != N:
        comb = jnp.pad(comb, ((0, N_pad - N), (0, 0), (0, 0)))

    out = pl.pallas_call(
        _pass_cell_kernel,
        out_shape=jax.ShapeDtypeStruct((N_pad, S_pad, 2 * H), jnp.bfloat16),
        grid=(nb,),
        in_specs=[
            pl.BlockSpec((nper, S_pad, C1), lambda i: (i, 0, 0)),
            pl.BlockSpec((C1, H), lambda i: (0, 0)),
            pl.BlockSpec((1, H), lambda i: (0, 0)),
            pl.BlockSpec((kernel_size, C1, 3 * H), lambda i: (0, 0, 0)),
            pl.BlockSpec((kernel_size, H, 3 * H), lambda i: (0, 0, 0)),
            pl.BlockSpec((1, 3 * H), lambda i: (0, 0)),
        ],
        out_specs=pl.BlockSpec((nper, S_pad, 2 * H), lambda i: (i, 0, 0)),
        compiler_params=pltpu.CompilerParams(
            dimension_semantics=("parallel",)),
    )(comb, prep["w1t"], prep["b1"], prep["wxh"], prep["wo"], prep["bc"])

    y = out[:N, :S, :H]                                   # (N, S, H) bf16
    h_new = out[:N, :S, H:]
    # match the module's mark==1 epilogue: permute(2, 1, 0) of (N, H, S)
    y = jnp.transpose(y, (1, 2, 0)).astype(jnp.float32)          # (S, H, N)
    h_new = jnp.transpose(h_new, (1, 2, 0)).astype(jnp.float32)  # (S, H, N)
    return y, h_new


def conv1d_passcell_2_v3(x, cur_state, prep, *, hidden_dim, kernel_size,
                         block_rows=2048):
    """Forward matching the PyTorch module's mark==1 branch, batched over N
    independent sections folded into a single pallas_call.

    x: (N, input_dim, S); cur_state = (c, h) with h: (N, hidden_dim, S).
    Returns (y, (c, h_new)) with y, h_new of shape (S, hidden_dim, N)
    (identical to the module's (S, hidden_dim, 1) when N == 1).
    """
    c, h = cur_state
    y, h_new = _forward(x, h, prep, hidden_dim=hidden_dim,
                        kernel_size=kernel_size, block_rows=block_rows)
    return y, (c, h_new)


def _reference(x, h, params, hidden_dim, kernel_size):
    """Pure-JAX f32 reference of the same forward (mark==1 branch), batched."""
    w1, b1, wc, bc = params["w1"], params["b1"], params["wc"], params["bc"]
    x2 = jnp.transpose(x, (0, 2, 1))
    h2 = jnp.transpose(h, (0, 2, 1))
    comb1 = jnp.concatenate([x2, h2], axis=2)
    o = jax.nn.sigmoid(comb1 @ w1.T + b1)
    comb2 = jnp.concatenate([x2, o, h2], axis=2)          # (N, S, C2)
    inp = jnp.transpose(comb2, (0, 2, 1))                 # (N, C2, S)
    pad = kernel_size // 2
    inp_p = jnp.pad(inp, ((0, 0), (0, 0), (pad, pad)), mode="edge")
    out = jax.lax.conv_general_dilated(
        inp_p, wc, window_strides=(1,), padding="VALID",
        dimension_numbers=("NCH", "OIH", "NCH")) + bc[None, :, None]
    xg, og, hg = jnp.split(out, 3, axis=1)
    xg, og, hg = jax.nn.sigmoid(xg), jax.nn.sigmoid(og), jax.nn.sigmoid(hg)
    hn = xg + og + hg
    # permute(2, 1, 0): (N, H, S) -> (S, H, N)
    return jnp.transpose(og, (2, 1, 0)), jnp.transpose(hn, (2, 1, 0))


if __name__ == "__main__":
    input_dim = 16
    hidden_dim = 32
    section_size = 16
    kernel_size = 3
    n_sections = 8          # independent sections batched into ONE pallas_call

    key = jax.random.PRNGKey(0)
    k_x, k_h, k_w1, k_b1, k_wc, k_bc = jax.random.split(key, 6)

    fan1 = input_dim + hidden_dim
    fanc = (input_dim + 2 * hidden_dim) * kernel_size
    params = {
        "w1": jax.random.uniform(k_w1, (hidden_dim, input_dim + hidden_dim),
                                 jnp.float32, -1.0, 1.0) / jnp.sqrt(fan1),
        "b1": jax.random.uniform(k_b1, (hidden_dim,),
                                 jnp.float32, -1.0, 1.0) / jnp.sqrt(fan1),
        "wc": jax.random.uniform(k_wc, (3 * hidden_dim,
                                        input_dim + 2 * hidden_dim,
                                        kernel_size),
                                 jnp.float32, -1.0, 1.0) / jnp.sqrt(fanc),
        "bc": jax.random.uniform(k_bc, (3 * hidden_dim,),
                                 jnp.float32, -1.0, 1.0) / jnp.sqrt(fanc),
    }

    # one-time weight re-layout (hoisted out of the forward path)
    prep = prepare_params(params, input_dim=input_dim,
                          hidden_dim=hidden_dim, kernel_size=kernel_size)

    # mark == 1 inputs, batched over sections:
    # x (N, input_dim, S), h (N, hidden_dim, S), c = None
    x = jax.random.normal(k_x, (n_sections, input_dim, section_size),
                          jnp.float32)
    h0 = 0.1 * jax.random.normal(k_h, (n_sections, hidden_dim, section_size),
                                 jnp.float32)
    c0 = None

    y, (c1, h1) = conv1d_passcell_2_v3(
        x, (c0, h0), prep, hidden_dim=hidden_dim, kernel_size=kernel_size)
    y = jax.block_until_ready(y)
    h1 = jax.block_until_ready(h1)

    y_ref, h_ref = _reference(x, h0, params, hidden_dim, kernel_size)
    assert y.shape == (section_size, hidden_dim, n_sections)
    assert h1.shape == (section_size, hidden_dim, n_sections)
    # bf16 MXU operands + bf16 output slab -> loosened tolerance vs f32 ref
    assert jnp.allclose(y, y_ref, rtol=2e-2, atol=2e-2)
    assert jnp.allclose(h1, h_ref, rtol=2e-2, atol=2e-2)

    print("KERNEL_OK")
</pallas_src>

<mosaic_0001>
module attributes {stable_mosaic.version = 11 : i64} {
  func.func @_pass_cell_kernel(%arg0: i32, %arg1: memref<4x16x48xbf16, #tpu.memory_space<vmem>>, %arg2: memref<48x32xbf16, #tpu.memory_space<vmem>>, %arg3: memref<1x32xf32, #tpu.memory_space<vmem>>, %arg4: memref<3x48x96xbf16, #tpu.memory_space<vmem>>, %arg5: memref<3x32x96xbf16, #tpu.memory_space<vmem>>, %arg6: memref<1x96xf32, #tpu.memory_space<vmem>>, %arg7: memref<4x16x64xbf16, #tpu.memory_space<vmem>>) attributes {dimension_semantics = [#tpu.dimension_semantics<parallel>], iteration_bounds = array<i64: 2>, scalar_prefetch = 0 : i64, scratch_operands = 0 : i64, tpu.core_type = #tpu.core_type<tc>, window_params = [{transform_indices = @transform_0, window_bounds = array<i64: 4, 16, 48>}, {pipeline_mode = #tpu.pipeline_mode<synchronous>, transform_indices = @transform_1, window_bounds = array<i64: 48, 32>}, {pipeline_mode = #tpu.pipeline_mode<synchronous>, transform_indices = @transform_2, window_bounds = array<i64: 1, 32>}, {pipeline_mode = #tpu.pipeline_mode<synchronous>, transform_indices = @transform_3, window_bounds = array<i64: 3, 48, 96>}, {pipeline_mode = #tpu.pipeline_mode<synchronous>, transform_indices = @transform_4, window_bounds = array<i64: 3, 32, 96>}, {pipeline_mode = #tpu.pipeline_mode<synchronous>, transform_indices = @transform_5, window_bounds = array<i64: 1, 96>}, {transform_indices = @transform_6, window_bounds = array<i64: 4, 16, 64>}]} {
    %c0 = arith.constant 0 : index
    %c0_0 = arith.constant 0 : index
    %c0_1 = arith.constant 0 : index
    %0 = vector.load %arg1[%c0, %c0_0, %c0_1] : memref<4x16x48xbf16, #tpu.memory_space<vmem>>, vector<4x16x48xbf16>
    %1 = vector.shape_cast %0 : vector<4x16x48xbf16> to vector<64x48xbf16>
    %c0_2 = arith.constant 0 : index
    %c0_3 = arith.constant 0 : index
    %2 = vector.load %arg2[%c0_2, %c0_3] : memref<48x32xbf16, #tpu.memory_space<vmem>>, vector<48x32xbf16>
    %cst = arith.constant dense<0.000000e+00> : vector<64x32xf32>
    %3 = tpu.matmul %1, %2, %cst {dimension_numbers = #tpu.dot_dimension_numbers<[1], [0], [0], [1], [0, 0, 1, 1], [], []>} : vector<64x48xbf16>, vector<48x32xbf16>, vector<64x32xf32> -> vector<64x32xf32>
    %c0_4 = arith.constant 0 : index
    %c0_5 = arith.constant 0 : index
    %4 = vector.load %arg3[%c0_4, %c0_5] : memref<1x32xf32, #tpu.memory_space<vmem>>, vector<1x32xf32>
    %5 = vector.broadcast %4 : vector<1x32xf32> to vector<64x32xf32>
    %6 = arith.addf %3, %5 : vector<64x32xf32>
    %cst_6 = arith.constant 0.000000e+00 : f32
    %7 = vector.broadcast %cst_6 : f32 to vector<64x32xf32>
    %8 = arith.subf %7, %6 : vector<64x32xf32>
    %9 = math.exp %8 : vector<64x32xf32>
    %cst_7 = arith.constant 1.000000e+00 : f32
    %10 = vector.broadcast %cst_7 : f32 to vector<64x32xf32>
    %11 = arith.addf %10, %9 : vector<64x32xf32>
    %12 = tpu.reciprocal %11 {approx = true} : vector<64x32xf32> -> vector<64x32xf32>
    %13 = arith.truncf %12 : vector<64x32xf32> to vector<64x32xbf16>
    %14 = vector.shape_cast %13 : vector<64x32xbf16> to vector<4x16x32xbf16>
    %15 = vector.extract_strided_slice %0 {offsets = [0, 0, 0], sizes = [4, 1, 48], strides = [1, 1, 1]} : vector<4x16x48xbf16> to vector<4x1x48xbf16>
    %16 = vector.extract_strided_slice %0 {offsets = [0, 0, 0], sizes = [4, 15, 48], strides = [1, 1, 1]} : vector<4x16x48xbf16> to vector<4x15x48xbf16>
    %17 = tpu.concatenate %15, %16 in 1 : vector<4x1x48xbf16>, vector<4x15x48xbf16> -> vector<4x16x48xbf16>
    %18 = vector.shape_cast %17 : vector<4x16x48xbf16> to vector<64x48xbf16>
    %19 = vector.extract_strided_slice %14 {offsets = [0, 0, 0], sizes = [4, 1, 32], strides = [1, 1, 1]} : vector<4x16x32xbf16> to vector<4x1x32xbf16>
    %20 = vector.extract_strided_slice %14 {offsets = [0, 0, 0], sizes = [4, 15, 32], strides = [1, 1, 1]} : vector<4x16x32xbf16> to vector<4x15x32xbf16>
    %21 = tpu.concatenate %19, %20 in 1 : vector<4x1x32xbf16>, vector<4x15x32xbf16> -> vector<4x16x32xbf16>
    %22 = vector.shape_cast %21 : vector<4x16x32xbf16> to vector<64x32xbf16>
    %c0_8 = arith.constant 0 : index
    %c0_9 = arith.constant 0 : index
    %c0_10 = arith.constant 0 : index
    %23 = vector.load %arg4[%c0_8, %c0_9, %c0_10] : memref<3x48x96xbf16, #tpu.memory_space<vmem>>, vector<1x48x96xbf16>
    %24 = vector.shape_cast %23 : vector<1x48x96xbf16> to vector<48x96xbf16>
    %cst_11 = arith.constant dense<0.000000e+00> : vector<64x96xf32>
    %25 = tpu.matmul %18, %24, %cst_11 {dimension_numbers = #tpu.dot_dimension_numbers<[1], [0], [0], [1], [0, 0, 1, 1], [], []>} : vector<64x48xbf16>, vector<48x96xbf16>, vector<64x96xf32> -> vector<64x96xf32>
    %c0_12 = arith.constant 0 : index
    %c0_13 = arith.constant 0 : index
    %c0_14 = arith.constant 0 : index
    %26 = vector.load %arg5[%c0_12, %c0_13, %c0_14] : memref<3x32x96xbf16, #tpu.memory_space<vmem>>, vector<1x32x96xbf16>
    %27 = vector.shape_cast %26 : vector<1x32x96xbf16> to vector<32x96xbf16>
    %cst_15 = arith.constant dense<0.000000e+00> : vector<64x96xf32>
    %28 = tpu.matmul %22, %27, %cst_15 {dimension_numbers = #tpu.dot_dimension_numbers<[1], [0], [0], [1], [0, 0, 1, 1], [], []>} : vector<64x32xbf16>, vector<32x96xbf16>, vector<64x96xf32> -> vector<64x96xf32>
    %29 = arith.addf %25, %28 : vector<64x96xf32>
    %30 = vector.shape_cast %0 : vector<4x16x48xbf16> to vector<64x48xbf16>
    %31 = vector.shape_cast %14 : vector<4x16x32xbf16> to vector<64x32xbf16>
    %c1 = arith.constant 1 : index
    %c0_16 = arith.constant 0 : index
    %c0_17 = arith.constant 0 : index
    %32 = vector.load %arg4[%c1, %c0_16, %c0_17] : memref<3x48x96xbf16, #tpu.memory_space<vmem>>, vector<1x48x96xbf16>
    %33 = vector.shape_cast %32 : vector<1x48x96xbf16> to vector<48x96xbf16>
    %cst_18 = arith.constant dense<0.000000e+00> : vector<64x96xf32>
    %34 = tpu.matmul %30, %33, %cst_18 {dimension_numbers = #tpu.dot_dimension_numbers<[1], [0], [0], [1], [0, 0, 1, 1], [], []>} : vector<64x48xbf16>, vector<48x96xbf16>, vector<64x96xf32> -> vector<64x96xf32>
    %c1_19 = arith.constant 1 : index
    %c0_20 = arith.constant 0 : index
    %c0_21 = arith.constant 0 : index
    %35 = vector.load %arg5[%c1_19, %c0_20, %c0_21] : memref<3x32x96xbf16, #tpu.memory_space<vmem>>, vector<1x32x96xbf16>
    %36 = vector.shape_cast %35 : vector<1x32x96xbf16> to vector<32x96xbf16>
    %cst_22 = arith.constant dense<0.000000e+00> : vector<64x96xf32>
    %37 = tpu.matmul %31, %36, %cst_22 {dimension_numbers = #tpu.dot_dimension_numbers<[1], [0], [0], [1], [0, 0, 1, 1], [], []>} : vector<64x32xbf16>, vector<32x96xbf16>, vector<64x96xf32> -> vector<64x96xf32>
    %38 = arith.addf %34, %37 : vector<64x96xf32>
    %39 = arith.addf %29, %38 : vector<64x96xf32>
    %40 = vector.extract_strided_slice %0 {offsets = [0, 15, 0], sizes = [4, 1, 48], strides = [1, 1, 1]} : vector<4x16x48xbf16> to vector<4x1x48xbf16>
    %41 = vector.extract_strided_slice %0 {offsets = [0, 1, 0], sizes = [4, 15, 48], strides = [1, 1, 1]} : vector<4x16x48xbf16> to vector<4x15x48xbf16>
    %42 = tpu.concatenate %41, %40 in 1 : vector<4x15x48xbf16>, vector<4x1x48xbf16> -> vector<4x16x48xbf16>
    %43 = vector.shape_cast %42 : vector<4x16x48xbf16> to vector<64x48xbf16>
    %44 = vector.extract_strided_slice %14 {offsets = [0, 15, 0], sizes = [4, 1, 32], strides = [1, 1, 1]} : vector<4x16x32xbf16> to vector<4x1x32xbf16>
    %45 = vector.extract_strided_slice %14 {offsets = [0, 1, 0], sizes = [4, 15, 32], strides = [1, 1, 1]} : vector<4x16x32xbf16> to vector<4x15x32xbf16>
    %46 = tpu.concatenate %45, %44 in 1 : vector<4x15x32xbf16>, vector<4x1x32xbf16> -> vector<4x16x32xbf16>
    %47 = vector.shape_cast %46 : vector<4x16x32xbf16> to vector<64x32xbf16>
    %c2 = arith.constant 2 : index
    %c0_23 = arith.constant 0 : index
    %c0_24 = arith.constant 0 : index
    %48 = vector.load %arg4[%c2, %c0_23, %c0_24] : memref<3x48x96xbf16, #tpu.memory_space<vmem>>, vector<1x48x96xbf16>
    %49 = vector.shape_cast %48 : vector<1x48x96xbf16> to vector<48x96xbf16>
    %cst_25 = arith.constant dense<0.000000e+00> : vector<64x96xf32>
    %50 = tpu.matmul %43, %49, %cst_25 {dimension_numbers = #tpu.dot_dimension_numbers<[1], [0], [0], [1], [0, 0, 1, 1], [], []>} : vector<64x48xbf16>, vector<48x96xbf16>, vector<64x96xf32> -> vector<64x96xf32>
    %c2_26 = arith.constant 2 : index
    %c0_27 = arith.constant 0 : index
    %c0_28 = arith.constant 0 : index
    %51 = vector.load %arg5[%c2_26, %c0_27, %c0_28] : memref<3x32x96xbf16, #tpu.memory_space<vmem>>, vector<1x32x96xbf16>
    %52 = vector.shape_cast %51 : vector<1x32x96xbf16> to vector<32x96xbf16>
    %cst_29 = arith.constant dense<0.000000e+00> : vector<64x96xf32>
    %53 = tpu.matmul %47, %52, %cst_29 {dimension_numbers = #tpu.dot_dimension_numbers<[1], [0], [0], [1], [0, 0, 1, 1], [], []>} : vector<64x32xbf16>, vector<32x96xbf16>, vector<64x96xf32> -> vector<64x96xf32>
    %54 = arith.addf %50, %53 : vector<64x96xf32>
    %55 = arith.addf %39, %54 : vector<64x96xf32>
    %c0_30 = arith.constant 0 : index
    %c0_31 = arith.constant 0 : index
    %56 = vector.load %arg6[%c0_30, %c0_31] : memref<1x96xf32, #tpu.memory_space<vmem>>, vector<1x96xf32>
    %57 = vector.broadcast %56 : vector<1x96xf32> to vector<64x96xf32>
    %58 = arith.addf %55, %57 : vector<64x96xf32>
    %cst_32 = arith.constant 0.000000e+00 : f32
    %59 = vector.broadcast %cst_32 : f32 to vector<64x96xf32>
    %60 = arith.subf %59, %58 : vector<64x96xf32>
    %61 = math.exp %60 : vector<64x96xf32>
    %cst_33 = arith.constant 1.000000e+00 : f32
    %62 = vector.broadcast %cst_33 : f32 to vector<64x96xf32>
    %63 = arith.addf %62, %61 : vector<64x96xf32>
    %64 = tpu.reciprocal %63 {approx = true} : vector<64x96xf32> -> vector<64x96xf32>
    %65 = vector.extract_strided_slice %64 {offsets = [0, 0], sizes = [64, 32], strides = [1, 1]} : vector<64x96xf32> to vector<64x32xf32>
    %66 = vector.extract_strided_slice %64 {offsets = [0, 32], sizes = [64, 32], strides = [1, 1]} : vector<64x96xf32> to vector<64x32xf32>
    %67 = arith.addf %65, %66 : vector<64x32xf32>
    %68 = vector.extract_strided_slice %64 {offsets = [0, 64], sizes = [64, 32], strides = [1, 1]} : vector<64x96xf32> to vector<64x32xf32>
    %69 = arith.addf %67, %68 : vector<64x32xf32>
    %70 = tpu.concatenate %65, %69 in 1 : vector<64x32xf32>, vector<64x32xf32> -> vector<64x64xf32>
    %71 = arith.truncf %70 : vector<64x64xf32> to vector<64x64xbf16>
    %72 = vector.shape_cast %71 : vector<64x64xbf16> to vector<4x16x64xbf16>
    %c0_34 = arith.constant 0 : index
    %c0_35 = arith.constant 0 : index
    %c0_36 = arith.constant 0 : index
    %73 = vector.load %arg7[%c0_34, %c0_35, %c0_36] : memref<4x16x64xbf16, #tpu.memory_space<vmem>>, vector<4x16x64xbf16>
    tpu.vector_store %arg7[%c0_34, %c0_35, %c0_36], %72 {strides = array<i32>} : memref<4x16x64xbf16, #tpu.memory_space<vmem>>, vector<4x16x64xbf16>,
    return
  }
  func.func @transform_0(%arg0: i32) -> (i32, i32, i32) {
    %c0_i32 = arith.constant 0 : i32
    %c0_i32_0 = arith.constant 0 : i32
    %c0_i32_1 = arith.constant 0 : i32
    return %arg0, %c0_i32, %c0_i32_0 : i32, i32, i32
  }
  func.func @transform_1(%arg0: i32) -> (i32, i32) {
    %c0_i32 = arith.constant 0 : i32
    %c0_i32_0 = arith.constant 0 : i32
    %c0_i32_1 = arith.constant 0 : i32
    return %c0_i32, %c0_i32_0 : i32, i32
  }
  func.func @transform_2(%arg0: i32) -> (i32, i32) {
    %c0_i32 = arith.constant 0 : i32
    %c0_i32_0 = arith.constant 0 : i32
    %c0_i32_1 = arith.constant 0 : i32
    return %c0_i32, %c0_i32_0 : i32, i32
  }
  func.func @transform_3(%arg0: i32) -> (i32, i32, i32) {
    %c0_i32 = arith.constant 0 : i32
    %c0_i32_0 = arith.constant 0 : i32
    %c0_i32_1 = arith.constant 0 : i32
    %c0_i32_2 = arith.constant 0 : i32
    return %c0_i32, %c0_i32_0, %c0_i32_1 : i32, i32, i32
  }
  func.func @transform_4(%arg0: i32) -> (i32, i32, i32) {
    %c0_i32 = arith.constant 0 : i32
    %c0_i32_0 = arith.constant 0 : i32
    %c0_i32_1 = arith.constant 0 : i32
    %c0_i32_2 = arith.constant 0 : i32
    return %c0_i32, %c0_i32_0, %c0_i32_1 : i32, i32, i32
  }
  func.func @transform_5(%arg0: i32) -> (i32, i32) {
    %c0_i32 = arith.constant 0 : i32
    %c0_i32_0 = arith.constant 0 : i32
    %c0_i32_1 = arith.constant 0 : i32
    return %c0_i32, %c0_i32_0 : i32, i32
  }
  func.func @transform_6(%arg0: i32) -> (i32, i32, i32) {
    %c0_i32 = arith.constant 0 : i32
    %c0_i32_0 = arith.constant 0 : i32
    %c0_i32_1 = arith.constant 0 : i32
    return %arg0, %c0_i32, %c0_i32_0 : i32, i32, i32
  }
}

</mosaic_0001>

<bundles_post_ra>
// kernel: _forward.1
= control target key start
LH: loop header
LB: loop body
LE: loop exit
PB: predicated region body
PF: predicated region fallthrough
CT: control target
= control target key end

     0   :  { %s1867_s21 = smov 0   ;;  %s2237_s0 = inlined_call_operand.vmem [shape: bf16[8,16,48], index: 0, kind: input, shape index: {}]   ;;  %s2238_s1 = inlined_call_operand.vmem [shape: bf16[48,32], index: 1, kind: input, shape index: {}]   ;;  %s2239_s2 = inlined_call_operand.vmem [shape: f32[1,32], index: 2, kind: input, shape index: {}]   ;;  %s2240_s3 = inlined_call_operand.vmem [shape: bf16[3,48,96], index: 3, kind: input, shape index: {}]   ;;  %s2241_s4 = inlined_call_operand.vmem [shape: bf16[3,32,96], index: 4, kind: input, shape index: {}]   ;;  %s2242_s5 = inlined_call_operand.vmem [shape: f32[1,96], index: 5, kind: input, shape index: {}]   ;;  %s2243_s6 = inlined_call_operand.vmem [shape: bf16[8,16,64], index: 6, kind: output, shape index: {}]  }
   0x1 LB: > { %s1409_s22 = sadd.s32 4294967295, %s1827_s21   ;;  %p1413_p0 = scmp.ge.s32.totalorder %s1827_s21, 1  ;;  %s1827_s21 = sphi %s1867_s21, %s16_s21  }
   0x2   : > { %p214_p1 = scmp.lt.s32.totalorder %s1827_s21, 3 }
   0x4   : > { %p215_p2 = pnand %p1413_p0, %p214_p1 }
   0x5   : > { %v1731_v0 = vld [vmem:[%s2238_s1] sm:$0xff] (!%p215_p2)   ;;  %s1414_s25 = sshll.u32 (!%p215_p2), %s1409_s22, 2  ;;  %v1732_v1 = vld [vmem:[%s2238_s1 + $0x8] sm:$0xff] (!%p215_p2)   ;;  %v1733_v2 = vld [vmem:[%s2238_s1 + $0x10] sm:$0xff] (!%p215_p2)   ;;  %vm320_vm0 = vcmask (!%p215_p2), 392192   ;;  %vm535_vm1 = vcmask (!%p215_p2), 261120  }
   0x6   : > { %218 = sbr.rel (%p215_p2) target bundleno = 824 (0x338), region = 44  ;;  %p247_p3 = scmp.lt.s32.totalorder (!%p215_p2), %s1414_s25, 7  ;;  %1562 = vmatprep.subr.bf16.mxu0 (!%p215_p2), %v1731_v0  ;;  %v1739_v15 = vld [vmem:[%s2241_s4 + $0x10] sm:$0xff] (!%p215_p2)   ;;  %v1740_v16 = vld [vmem:[%s2241_s4] sm:$0xff] (!%p215_p2)   ;;  %v1741_v17 = vld [vmem:[%s2241_s4 + $0x18] sm:$0xff] (!%p215_p2)   ;;  %vm470_vm2 = vcmask (!%p215_p2), 1040384  }
   0x7   : > { %1563 = vmatpush3.bf16.msra.mxu0 (!%p215_p2), %v1731_v0  ;;  %1602 = vmatprep.subr.bf16.mxu1 (!%p215_p2), %v1739_v15  ;;  %v1944_v18 = vld [vmem:[%s2240_s3 + $0x18] sm:$0xff] (!%p215_p2)   ;;  %v1743_v19 = vld [vmem:[%s2241_s4 + $0x8] sm:$0xff] (!%p215_p2)   ;;  %v1953_v20 = vld [vmem:[%s2240_s3] sm:$0xff] (!%p215_p2)   ;;  %vm471_vm3 = vsmask.f32 (!%p215_p2), 256  ;;  %vm916_vm5 = vcmask (!%p215_p2), 1047552  }
   0x8   : > { %1564 = vmatprep.subr.bf16.mxu0 (!%p215_p2), %v1732_v1  ;;  %1603 = vmatpush3.bf16.msra.mxu1 (!%p215_p2), %v1739_v15  ;;  %v1420_v21 = vld [vmem:[%s2239_s2] ss:$0 sm:$0xff] (!%p215_p2)  ;;  %vm1982_vm4 = vmand (!%p215_p2), %vm470_vm2, %vm471_vm3  ;;  %vm917_vm6 = vsmask.f32 (!%p215_p2), 7424  ;;  %s1829_s24 = smov (!%p215_p2), 64   ;;  %s1830_s26 = smov (!%p215_p2), 96  }
   0x9   : > { %1604 = vmatprep.subr.bf16.mxu1 (!%p215_p2), %v1741_v17  ;;  %vm2059_vm7 = vmand (!%p215_p2), %vm916_vm5, %vm917_vm6  ;;  %s1831_s27 = smov (!%p215_p2), 32   ;;  %vm1342_vm8 = vcmask (!%p215_p2), 519168  }
   0xb   : > { %1565 = vmatpush3.bf16.msra.mxu0 (!%p215_p2), %v1732_v1 }
   0xc   : > { %1566 = vmatprep.subr.bf16.mxu0 (!%p215_p2), %v1733_v2  ;;  %1605 = vmatpush3.bf16.msra.mxu1 (!%p215_p2), %v1741_v17 }
   0xd   : > { %s2249_s25 = smov (!%p247_p3, %s1414_s25), 7  ;;  %1654 = vmatprep.subr.bf16.mxu1 %v1944_v18 }
   0xe   : > { %s1506_s30 = sshll.u32 %s2249_s25, 3 }
   0xf   : > { %s251_s9 = scalar_lea.vmem %s2237_s0, %s1506_s30  ;;  %1567 = vmatpush3.bf16.msra.mxu0 %v1733_v2  ;;  %s258_s7 = scalar_lea.vmem %s2243_s6, %s1506_s30 }
  0x10   : > { %v1892_v3 = vld [vmem:[%s251_s9] sm:$0xf]  ;;  %v1894_v4 = vld [vmem:[%s251_s9 + $0x4] sm:$0xf]  ;;  %v1896_v5 = vld [vmem:[%s251_s9 + $0x8] sm:$0xf]  ;;  %1576 = vmatprep.subr.bf16.mxu0 %v1740_v16 }
  0x11   : > { %v1900_v6 = vcombine.low %v1892_v3, %v1894_v4  ;;  %v1902_v7 = vld [vmem:[%s251_s9 + $0xc] sm:$0xf]  ;;  %v1904_v8 = vld [vmem:[%s251_s9 + $0x10] sm:$0xf]  ;;  %v1906_v9 = vld [vmem:[%s251_s9 + $0x14] sm:$0xf] }
  0x12   : > { %v1912_v10 = vcombine.low %v1896_v5, %v1902_v7  ;;  %v1916_v11 = vcombine.low %v1904_v8, %v1906_v9  ;;  %v1918_v12 = vld [vmem:[%s251_s9 + $0x18] sm:$0xf]  ;;  %v1920_v13 = vld [vmem:[%s251_s9 + $0x1c] sm:$0xf] }
  0x13   : > { %1568 = vmatprep.mubr.msk.bf16.mxu0 %vm320_vm0, %v1900_v6  ;;  %v1928_v14 = vcombine.low %v1918_v12, %v1920_v13 }
  0x14   : > { %1569 = vmatmul.mubr.msk.bf16.vlgmr.msra.gmra.mrb[0].mxu0 %vm320_vm0, %v1912_v10 }
  0x15   : > { %1572 = vmatprep.mubr.msk.bf16.mxu0 %vm320_vm0, %v1916_v11  ;;  %1577 = vmatpush3.bf16.msra.mxu0 %v1740_v16 }
  0x16   : > { %1578 = vmatprep.subr.bf16.mxu0 %v1743_v19 }
  0x19   : > { %1579 = vmatpush3.bf16.msra.mxu0 %v1743_v19 }
  0x1a   : > { %1588 = vmatprep.subr.bf16.mxu0 %v1953_v20 }
  0x1c   : > { %1573 = vmatmul.mubr.msk.bf16.gmra.mrb[4].mxu0 %vm320_vm0, %v1928_v14 }
  0xe7   : > { %v1570_v22 = vpop.f32.mrb[0].mxu0 }
  0xe8   : > { %v376_v23 = vadd.f32 %v1570_v22, %v1420_v21  ;;  %v367_v24 = vpop.f32.mrb[1].mxu0 }
  0xe9   : > { %v368_v25 = vadd.f32 %v1420_v21, %v367_v24  ;;  %v1571_v26 = vpop.f32.mrb[2].mxu0 }
  0xea   : > { %v400_v27 = vsub.f32 0.0, %v376_v23  ;;  %v379_v28 = vadd.f32 %v1571_v26, %v1420_v21  ;;  %v370_v29 = vpop.f32.mrb[3].mxu0  ;;  %v1966_v26 = vld [vmem:[%s2240_s3 + $0x20] sm:$0xff]  }
  0xeb   : > { %v398_v30 = vsub.f32 0.0, %v368_v25  ;;  %v371_v31 = vadd.f32 %v1420_v21, %v370_v29 }
  0xec   : > { %v410_v32 = vmul.f32 1.442695, %v400_v27  ;;  %v401_v33 = vsub.f32 0.0, %v379_v28 }
  0xed   : > { %v406_v34 = vmul.f32 1.442695, %v398_v30  ;;  %v399_v35 = vsub.f32 0.0, %v371_v31 }
  0xee   : > { %1757 = vpow2.f32 %v410_v32  ;;  %v412_v36 = vmul.f32 1.442695, %v401_v33 }
  0xef   : > { %1759 = vpow2.f32 %v406_v34  ;;  %v408_v37 = vmul.f32 1.442695, %v399_v35  ;;  %v1574_v38 = vpop.f32.mrb[4].mxu0  ;;  %v442_v34 = vshrl.u32 %v1900_v6, 16 }
  0xf0   : > { %1761 = vpow2.f32 %v412_v36  ;;  %v392_v39 = vadd.f32 %v1574_v38, %v1420_v21  ;;  %v383_v40 = vpop.f32.mrb[5].mxu0  ;;  %v1992_v38 = vld [vmem:[%s2240_s3 + $0x28] sm:$0xff]  }
  0xf1   : > { %1763 = vpow2.f32 %v408_v37  ;;  %v384_v41 = vadd.f32 %v1420_v21, %v383_v40  ;;  %v1575_v42 = vpop.f32.mrb[6].mxu0 }
  0xf2   : > { %v404_v43 = vsub.f32 0.0, %v392_v39  ;;  %v395_v44 = vadd.f32 %v1575_v42, %v1420_v21  ;;  %v386_v45 = vpop.f32.mrb[7].mxu0 }
  0xf3   : > { %v402_v46 = vsub.f32 0.0, %v384_v41  ;;  %v387_v47 = vadd.f32 %v1420_v21, %v386_v45  ;;  %v1747_v45 = vld [vmem:[%s2240_s3 + $0x8] sm:$0xff]  }
  0xf4   : > { %v418_v48 = vmul.f32 1.442695, %v404_v43  ;;  %v405_v49 = vsub.f32 0.0, %v395_v44 }
  0xf5   : > { %v414_v50 = vmul.f32 1.442695, %v402_v46  ;;  %v403_v51 = vsub.f32 0.0, %v387_v47  ;;  %v444_v46 = vrot.slane %v442_v34, 7  ;;  %v445_v47 = vshll.u32 %v1900_v6, 16 }
  0xf6   : > { %1765 = vpow2.f32 %v418_v48  ;;  %v420_v52 = vmul.f32 1.442695, %v405_v49 }
  0xf7   : > { %1767 = vpow2.f32 %v414_v50  ;;  %v416_v53 = vmul.f32 1.442695, %v403_v51  ;;  %v1749_v50 = vld [vmem:[%s2241_s4 + $0x20] sm:$0xff]   ;;  %v448_v51 = vshrl.u32 %v1912_v10, 16 }
  0xf8   : > { %v1758_v54 = vpop.eup %1757  ;;  %1769 = vpow2.f32 %v420_v52 }
  0xf9   : > { %v1760_v55 = vpop.eup %1759  ;;  %v424_v56 = vadd.f32 1.0, %v1758_v54  ;;  %1771 = vpow2.f32 %v416_v53 }
  0xfa   : > { %v1762_v57 = vpop.eup %1761  ;;  %v422_v58 = vadd.f32 1.0, %v1760_v55 }
  0xfb   : > { %v1764_v59 = vpop.eup %1763  ;;  %1773 = vrcp.f32 %v424_v56  ;;  %v425_v60 = vadd.f32 1.0, %v1762_v57  ;;  %v1748_v57 = vld [vmem:[%s2240_s3 + $0x10] sm:$0xff]  }
  0xfc   : > { %1775 = vrcp.f32 %v422_v58  ;;  %v423_v61 = vadd.f32 1.0, %v1764_v59  ;;  %v447_v58 = vor.u32 %v445_v47, %v444_v46  ;;  %v1469_v46 = vcombine.low %v1902_v7, %v1902_v7 }
  0xfd   : > { %1777 = vrcp.f32 %v425_v60 }
  0xfe   : > { %1779 = vrcp.f32 %v423_v61  ;;  %v450_v61 = vrot.slane %v448_v51, 7 }
 0x100   : > { %v1766_v62 = vpop.eup %1765 }
 0x101   : > { %v1768_v63 = vpop.eup %1767  ;;  %v428_v0 = vadd.f32 1.0, %v1766_v62  ;;  %v451_v62 = vshll.u32 %v1912_v10, 16 }
 0x102   : > { %v1770_v1 = vpop.eup %1769  ;;  %v426_v2 = vadd.f32 1.0, %v1768_v63 }
 0x103   : > { %v1772_v15 = vpop.eup %1771  ;;  %1781 = vrcp.f32 %v428_v0  ;;  %v429_v16 = vadd.f32 1.0, %v1770_v1  ;;  %v473_v1 = vsel %vm1982_vm4, %v1892_v3, %v447_v58 }
 0x104   : > { %1783 = vrcp.f32 %v426_v2  ;;  %v427_v17 = vadd.f32 1.0, %v1772_v15  ;;  %v457_v15 = vshll.u32 %v1916_v11, 16 }
 0x105   : > { %v1774_v19 = vpop.eup %1773  ;;  %1785 = vrcp.f32 %v429_v16 }
 0x106   : > { %v1776_v21 = vpop.eup %1775  ;;  %1787 = vrcp.f32 %v427_v17  ;;  %v453_v17 = vor.u32 %v451_v62, %v450_v61 }
 0x107   : > { %v1778_v22 = vpop.eup %1777 }
 0x108   : > { %v1780_v23 = vpop.eup %1779  ;;  %v1959_v24 = vpack.c.bf16 %v1778_v22, %v1774_v19  ;;  %v460_v19 = vshrl.u32 %v1928_v14, 16 }
 0x109   : > { %v1961_v25 = vpack.c.bf16 %v1780_v23, %v1776_v21  ;;  %v1750_v23 = vld [vmem:[%s2241_s4 + $0x28] sm:$0xff]  }
 0x10a   : > { %v485_v27 = vshrl.u32 %v1959_v24, 16  ;;  %v488_v30 = vshll.u32 %v1959_v24, 16 }
 0x10b   : > { %1606 = vmatprep.mubr.msk.bf16.mxu1 %vm535_vm1, %v1961_v25  ;;  %v478_v28 = vshrl.u32 %v1961_v25, 16  ;;  %v481_v33 = vshll.u32 %v1961_v25, 16 }
 0x10c   : > { %1607 = vmatmul.mubr.msk.bf16.vlgmr.msra.gmra.mrb[0].mxu1 %vm535_vm1, %v1959_v24  ;;  %v487_v29 = vrot.slane %v485_v27, 7 }
 0x10d   : > { %v1782_v31 = vpop.eup %1781  ;;  %1657 = vmatpush3.bf16.msra.mxu1 %v1944_v18  ;;  %v480_v32 = vrot.slane %v478_v28, 7  ;;  %v923_v63 = vrot.slane %v481_v33, 1 }
 0x10e   : > { %v1784_v35 = vpop.eup %1783  ;;  %1655 = vmatprep.subr.bf16.mxu1 %v1966_v26  ;;  %v490_v37 = vor.u32 %v488_v30, %v487_v29  ;;  %v474_v29 = vsel %vm1982_vm4, %v1896_v5, %v453_v17 }
 0x10f   : > { %v1786_v39 = vpop.eup %1785  ;;  %v483_v40 = vor.u32 %v481_v33, %v480_v32  ;;  %v924_v3 = vor.u32 %v923_v63, %v478_v28  ;;  %v925_v28 = vrot.slane %v488_v30, 1  ;;  %v462_v33 = vrot.slane %v460_v19, 7  ;;  %v1751_v30 = vld [vmem:[%s2240_s3 + $0x30] sm:$0xff]  }
 0x110   : > { %v1788_v41 = vpop.eup %1787  ;;  %v1994_v42 = vpack.c.bf16 %v1786_v39, %v1782_v31  ;;  %v510_v48 = vsel %vm1982_vm4, %v1959_v24, %v490_v37 }
 0x111   : > { %v509_v43 = vsel %vm1982_vm4, %v1961_v25, %v483_v40  ;;  %v1999_v44 = vpack.c.bf16 %v1788_v41, %v1784_v35  ;;  %1658 = vmatpush3.bf16.msra.mxu1 %v1966_v26  ;;  %v935_v31 = vsel %vm2059_vm7, %v924_v3, %v1961_v25  ;;  %v463_v35 = vshll.u32 %v1928_v14, 16 }
 0x112   : > { %1580 = vmatprep.mubr.msk.bf16.mxu0 %vm535_vm1, %v509_v43  ;;  %1656 = vmatprep.subr.bf16.mxu1 %v1992_v38  ;;  %v499_v49 = vshrl.u32 %v1994_v42, 16  ;;  %v502_v54 = vshll.u32 %v1994_v42, 16  ;;  %v926_v25 = vor.u32 %v925_v28, %v485_v27  ;;  %v896_v40 = vrot.slane %v445_v47, 1 }
 0x113   : > { %1581 = vmatmul.mubr.msk.bf16.vlgmr.msra.gmra.mrb[8].mxu0 %vm535_vm1, %v510_v48  ;;  %1610 = vmatprep.mubr.msk.bf16.mxu1 %vm535_vm1, %v1999_v44  ;;  %v492_v52 = vshrl.u32 %v1999_v44, 16  ;;  %v495_v56 = vshll.u32 %v1999_v44, 16  ;;  %v465_v39 = vor.u32 %v463_v35, %v462_v33  ;;  %v1470_v47 = vcombine.low %v1906_v9, %v1906_v9 }
 0x114   : > { %1611 = vmatmul.mubr.msk.bf16.gmra.mrb[4].mxu1 %vm535_vm1, %v1994_v42  ;;  %1589 = vmatpush3.bf16.msra.mxu0 %v1953_v20  ;;  %v501_v53 = vrot.slane %v499_v49, 7  ;;  %v454_v20 = vshrl.u32 %v1916_v11, 16  ;;  %v936_v27 = vsel %vm2059_vm7, %v926_v25, %v1959_v24  ;;  %v1753_v24 = vld [vmem:[%s2240_s3 + $0x40] sm:$0xff]   ;;  %v902_v48 = vrot.slane %v463_v35, 1 }
 0x115   : > { %v494_v55 = vrot.slane %v492_v52, 7  ;;  %1659 = vmatpush3.bf16.msra.mxu1 %v1992_v38  ;;  %1590 = vmatprep.subr.bf16.mxu0 %v1747_v45  ;;  %v927_v32 = vrot.slane %v495_v56, 1  ;;  %v476_v43 = vsel %vm1982_vm4, %v1918_v12, %v465_v39  ;;  %v1471_v9 = vcombine.low %v1920_v13, %v1920_v13 }
 0x116   : > { %v504_v59 = vor.u32 %v502_v54, %v501_v53  ;;  %1624 = vmatprep.mubr.msk.bf16.mxu1 %vm320_vm0, %v1916_v11  ;;  %1628 = vmatprep.subr.bf16.mxu1 %v1749_v50  ;;  %v456_v2 = vrot.slane %v454_v20, 7  ;;  %v903_v11 = vor.u32 %v902_v48, %v460_v19  ;;  %v1495_v19 = vld [vmem:[%s2242_s5] ss:$0 sm:$0xff] }
 0x117   : > { %v497_v60 = vor.u32 %v495_v56, %v494_v55  ;;  %v928_v37 = vor.u32 %v927_v32, %v492_v52 }
 0x118   : > { %1591 = vmatpush3.bf16.msra.mxu0 %v1747_v45  ;;  %v512_v16 = vsel %vm1982_vm4, %v1994_v42, %v504_v59  ;;  %v459_v22 = vor.u32 %v457_v15, %v456_v2  ;;  %v897_v45 = vor.u32 %v896_v40, %v442_v34  ;;  %v900_v34 = vrot.slane %v457_v15, 1 }
 0x119   : > { %v511_v0 = vsel %vm1982_vm4, %v1999_v44, %v497_v60  ;;  %1592 = vmatprep.subr.bf16.mxu0 %v1748_v57  ;;  %v937_v41 = vsel %vm2059_vm7, %v928_v37, %v1999_v44  ;;  %v1468_v44 = vcombine.low %v1894_v4, %v1894_v4 }
 0x11a   : > { %1584 = vmatprep.mubr.msk.bf16.mxu0 %vm535_vm1, %v511_v0  ;;  %v475_v5 = vsel %vm1982_vm4, %v1904_v8, %v459_v22  ;;  %v1752_v8 = vld [vmem:[%s2240_s3 + $0x38] sm:$0xff]  }
 0x11b   : > { %1585 = vmatmul.mubr.msk.bf16.gmra.mrb[12].mxu0 %vm535_vm1, %v512_v16  ;;  %v919_v36 = vsel %vm2059_vm7, %v897_v45, %v1468_v44 }
 0x11c   : > { %1593 = vmatpush3.bf16.msra.mxu0 %v1748_v57  ;;  %1594 = vmatprep.mubr.msk.bf16.mxu0 %vm320_vm0, %v473_v1 }
 0x11d   : > { %1614 = vmatprep.subr.bf16.mxu0 %v1944_v18 }
 0x120   : > { %1625 = vmatmul.mubr.msk.bf16.vlgmr.msra.gmra.mrb[4].mxu1 %vm320_vm0, %v1928_v14 }
 0x121   : > { %1629 = vmatpush3.bf16.msra.mxu1 %v1749_v50  ;;  %1632 = vmatprep.mubr.msk.bf16.mxu1 %vm535_vm1, %v935_v31 }
 0x122   : > { %1630 = vmatprep.subr.bf16.mxu1 %v1750_v23 }
 0x123   : > { %1595 = vmatmul.mubr.msk.bf16.vlgmr.msra.gmra.mrb[8].mxu0 %vm320_vm0, %v474_v29 }
 0x124   : > { %1615 = vmatpush3.bf16.msra.mxu0 %v1944_v18  ;;  %1598 = vmatprep.mubr.msk.bf16.mxu0 %vm320_vm0, %v475_v5  ;;  %v929_v18 = vrot.slane %v502_v54, 1 }
 0x125   : > { %1631 = vmatpush3.bf16.msra.mxu1 %v1750_v23  ;;  %1616 = vmatprep.subr.bf16.mxu0 %v1966_v26 }
 0x126   : > { %1640 = vmatprep.subr.bf16.mxu1 %v1751_v30  ;;  %v930_v12 = vor.u32 %v929_v18, %v499_v49 }
 0x128   : > { %1633 = vmatmul.mubr.msk.bf16.vlgmr.msra.gmra.mrb[8].mxu1 %vm535_vm1, %v936_v27  ;;  %1617 = vmatpush3.bf16.msra.mxu0 %v1966_v26  ;;  %v898_v26 = vrot.slane %v451_v62, 1  ;;  %v938_v4 = vsel %vm2059_vm7, %v930_v12, %v1994_v42 }
 0x129   : > { %1641 = vmatpush3.bf16.msra.mxu1 %v1751_v30  ;;  %1636 = vmatprep.mubr.msk.bf16.mxu1 %vm535_vm1, %v937_v41 }
 0x12a   : > { %1642 = vmatprep.subr.bf16.mxu1 %v1752_v8  ;;  %1618 = vmatprep.subr.bf16.mxu0 %v1992_v38 }
 0x12b   : > { %1599 = vmatmul.mubr.msk.bf16.gmra.mrb[12].mxu0 %vm320_vm0, %v476_v43 }
 0x12c   : > { %1619 = vmatpush3.bf16.msra.mxu0 %v1992_v38  ;;  %1620 = vmatprep.mubr.msk.bf16.mxu0 %vm320_vm0, %v1900_v6  ;;  %v899_v6 = vor.u32 %v898_v26, %v448_v51  ;;  %v901_v38 = vor.u32 %v900_v34, %v454_v20 }
 0x12d   : > { %1643 = vmatpush3.bf16.msra.mxu1 %v1752_v8 }
 0x12e   : > { %1644 = vmatprep.subr.bf16.mxu1 %v1753_v24  ;;  %v920_v42 = vsel %vm2059_vm7, %v899_v6, %v1469_v46  ;;  %v921_v7 = vsel %vm2059_vm7, %v901_v38, %v1470_v47 }
 0x130   : > { %1637 = vmatmul.mubr.msk.bf16.gmra.mrb[4].mxu1 %vm535_vm1, %v938_v4 }
 0x131   : > { %1645 = vmatpush3.bf16.msra.mxu1 %v1753_v24  ;;  %1646 = vmatprep.mubr.msk.bf16.mxu1 %vm320_vm0, %v919_v36 }
 0x133   : > { %1621 = vmatmul.mubr.msk.bf16.vlgmr.msra.gmra.mrb[16].mxu0 %vm320_vm0, %v1912_v10  ;;  %v922_v10 = vsel %vm2059_vm7, %v903_v11, %v1471_v9 }
 0x138   : > { %1647 = vmatmul.mubr.msk.bf16.vlgmr.msra.gmra.mrb[8].mxu1 %vm320_vm0, %v920_v42 }
 0x139   : > { %1650 = vmatprep.mubr.msk.bf16.mxu1 %vm320_vm0, %v921_v7 }
 0x140   : > { %1651 = vmatmul.mubr.msk.bf16.gmra.mrb[4].mxu1 %vm320_vm0, %v922_v10 }
 0x1df   : > { %v1608_v49 = vpop.f32.mrb[0].mxu1 }
 0x1e0   : > { %v774_v50 = vpop.f32.mrb[1].mxu1 }
 0x1e1   : > { %v1609_v51 = vpop.f32.mrb[2].mxu1 }
 0x1e2   : > { %v777_v52 = vpop.f32.mrb[3].mxu1 }
 0x1f6   : > { %v1596_v53 = vpop.f32.mrb[8].mxu0 }
 0x1f7   : > { %v1660_v54 = vadd.f32 %v1608_v49, %v1596_v53  ;;  %v677_v55 = vpop.f32.mrb[9].mxu0 }
 0x1f8   : > { %v1663_v56 = vadd.f32 %v774_v50, %v677_v55  ;;  %v1597_v57 = vpop.f32.mrb[10].mxu0 }
 0x1f9   : > { %v1666_v58 = vadd.f32 %v1609_v51, %v1597_v57  ;;  %v680_v14 = vpop.f32.mrb[11].mxu0 }
 0x1fa   : > { %v1669_v20 = vadd.f32 %v777_v52, %v680_v14 }
 0x1fe   : > { %v1600_v59 = vpop.f32.mrb[12].mxu0 }
 0x1ff   : > { %v693_v60 = vpop.f32.mrb[13].mxu0 }
 0x200   : > { %v1601_v13 = vpop.f32.mrb[14].mxu0 }
 0x201   : > { %v696_v61 = vpop.f32.mrb[15].mxu0 }
 0x206   : > { %v1622_v62 = vpop.f32.mrb[16].mxu0 }
 0x207   : > { %v1661_v63 = vadd.f32 %v1660_v54, %v1622_v62  ;;  %v857_v0 = vpop.f32.mrb[17].mxu0 }
 0x208   : > { %v1664_v1 = vadd.f32 %v1663_v56, %v857_v0  ;;  %v1623_v2 = vpop.f32.mrb[18].mxu0 }
 0x209   : > { %v1667_v15 = vadd.f32 %v1666_v58, %v1623_v2  ;;  %v860_v16 = vpop.f32.mrb[19].mxu0 }
 0x20a   : > { %v1670_v17 = vadd.f32 %v1669_v20, %v860_v16 }
 0x20b   : > { %v1648_v3 = vpop.f32.mrb[8].mxu1 }
 0x20c   : > { %v1662_v21 = vadd.f32 %v1661_v63, %v1648_v3  ;;  %v1104_v22 = vpop.f32.mrb[9].mxu1 }
 0x20d   : > { %v1665_v23 = vadd.f32 %v1664_v1, %v1104_v22  ;;  %v1649_v29 = vpop.f32.mrb[10].mxu1 }
 0x20e   : > { %v1152_v28 = vadd.f32 %v1662_v21, %v1495_v19  ;;  %v1668_v31 = vadd.f32 %v1667_v15, %v1649_v29  ;;  %v1107_v32 = vpop.f32.mrb[11].mxu1 }
 0x20f   : > { %v1150_v33 = vadd.f32 %v1665_v23, %v1495_v19  ;;  %v1671_v35 = vadd.f32 %v1670_v17, %v1107_v32 }
 0x210   : > { %v1160_v5 = vsub.f32 0.0, %v1152_v28  ;;  %v1153_v30 = vadd.f32 %v1668_v31, %v1495_v19 }
 0x211   : > { %v1158_v25 = vsub.f32 0.0, %v1150_v33  ;;  %v1151_v37 = vadd.f32 %v1671_v35, %v1495_v19 }
 0x212   : > { %v1170_v39 = vmul.f32 1.442695, %v1160_v5  ;;  %v1161_v8 = vsub.f32 0.0, %v1153_v30 }
 0x213   : > { %v1166_v40 = vmul.f32 1.442695, %v1158_v25  ;;  %v1652_v27 = vpop.f32.mrb[4].mxu1  ;;  %v1159_v41 = vsub.f32 0.0, %v1151_v37 }
 0x214   : > { %1789 = vpow2.f32 %v1170_v39  ;;  %v1172_v18 = vmul.f32 1.442695, %v1161_v8  ;;  %v1672_v43 = vadd.f32 %v1652_v27, %v1600_v59  ;;  %v1120_v24 = vpop.f32.mrb[5].mxu1 }
 0x215   : > { %1791 = vpow2.f32 %v1166_v40  ;;  %v1673_v45 = vadd.f32 %v1120_v24, %v693_v60  ;;  %v1653_v44 = vpop.f32.mrb[6].mxu1  ;;  %v1168_v46 = vmul.f32 1.442695, %v1159_v41 }
 0x216   : > { %1793 = vpow2.f32 %v1172_v18  ;;  %v1156_v12 = vadd.f32 %v1672_v43, %v1495_v19  ;;  %v1674_v26 = vadd.f32 %v1653_v44, %v1601_v13  ;;  %v1123_v36 = vpop.f32.mrb[7].mxu1 }
 0x217   : > { %v1154_v34 = vadd.f32 %v1673_v45, %v1495_v19  ;;  %v1675_v4 = vadd.f32 %v1123_v36, %v696_v61  ;;  %1795 = vpow2.f32 %v1168_v46 }
 0x218   : > { %v1164_v6 = vsub.f32 0.0, %v1156_v12  ;;  %v1157_v38 = vadd.f32 %v1674_v26, %v1495_v19 }
 0x219   : > { %v1155_v47 = vadd.f32 %v1675_v4, %v1495_v19  ;;  %v1162_v42 = vsub.f32 0.0, %v1154_v34 }
 0x21a   : > { %v1165_v48 = vsub.f32 0.0, %v1157_v38  ;;  %v1178_v7 = vmul.f32 1.442695, %v1164_v6 }
 0x21b   : > { %v1163_v11 = vsub.f32 0.0, %v1155_v47  ;;  %v1174_v49 = vmul.f32 1.442695, %v1162_v42 }
 0x21c   : > { %v1180_v9 = vmul.f32 1.442695, %v1165_v48  ;;  %1797 = vpow2.f32 %v1178_v7 }
 0x21d   : > { %v1176_v52 = vmul.f32 1.442695, %v1163_v11 }
 0x21e   : > { %v1790_v10 = vpop.eup %1789  ;;  %1799 = vpow2.f32 %v1180_v9 }
 0x21f   : > { %v1792_v50 = vpop.eup %1791  ;;  %v1184_v51 = vadd.f32 1.0, %v1790_v10 }
 0x220   : > { %v1794_v53 = vpop.eup %1793  ;;  %v1182_v54 = vadd.f32 1.0, %v1792_v50 }
 0x221   : > { %1801 = vrcp.f32 %v1184_v51  ;;  %v1185_v55 = vadd.f32 1.0, %v1794_v53  ;;  %v1796_v56 = vpop.eup %1795 }
 0x222   : > { %1803 = vpow2.f32 %v1174_v49  ;;  %v1183_v58 = vadd.f32 1.0, %v1796_v56 }
 0x223   : > { %1805 = vpow2.f32 %v1176_v52 }
 0x224   : > { %1807 = vrcp.f32 %v1182_v54 }
 0x225   : > { %1809 = vrcp.f32 %v1185_v55 }
 0x226   : > { %v1798_v57 = vpop.eup %1797  ;;  %1811 = vrcp.f32 %v1183_v58 }
 0x227   : > { %v1188_v60 = vadd.f32 1.0, %v1798_v57 }
 0x228   : > { %v1800_v14 = vpop.eup %1799 }
 0x229   : > { %v1189_v61 = vadd.f32 1.0, %v1800_v14  ;;  %1813 = vrcp.f32 %v1188_v60 }
 0x22b   : > { %v2157_v20 = vpop.eup %1801  ;;  %1815 = vrcp.f32 %v1189_v61 }
 0x22c   : > { %v1804_v59 = vpop.eup %1803  ;;  %1242 = vrot.lane.b32.xlu0 %v2157_v20, %s1829_s24  ;;  %1210 = vrot.lane.b32.xlu1 %v2157_v20, %s1830_s26 }
 0x22d   : > { %v1806_v13 = vpop.eup %1805  ;;  %v1186_v0 = vadd.f32 1.0, %v1804_v59 }
 0x22e   : > { %v2162_v62 = vpop.eup %1807  ;;  %v1187_v1 = vadd.f32 1.0, %v1806_v13 }
 0x22f   : > { %v2164_v63 = vpop.eup %1809  ;;  %1817 = vrcp.f32 %v1186_v0 }
 0x230   : > { %1206 = vrot.lane.b32.xlu0 %v2162_v62, %s1830_s26  ;;  %1212 = vrot.lane.b32.xlu1 %v2164_v63, %s1830_s26  ;;  %1819 = vrcp.f32 %v1187_v1  ;;  %v2172_v2 = vpop.eup %1811 }
 0x233   : > { %v2177_v15 = vpop.eup %1813 }
 0x234   : > { %1238 = vrot.lane.b32.xlu0 %v2162_v62, %s1829_s24  ;;  %1244 = vrot.lane.b32.xlu1 %v2164_v63, %s1829_s24 }
 0x235   : > { %v2179_v16 = vpop.eup %1815 }
 0x238   : > { %1240 = vrot.lane.b32.xlu1 %v2172_v2, %s1829_s24  ;;  %1208 = vrot.lane.b32.xlu0 %v2172_v2, %s1830_s26 }
 0x239   : > { %v2183_v17 = vpop.eup %1817 }
 0x23a   : > { %v2185_v3 = vpop.eup %1819 }
 0x23c   : > { %1220 = vrot.lane.b32.xlu1 %v2179_v16, %s1830_s26  ;;  %1218 = vrot.lane.b32.xlu0 %v2177_v15, %s1830_s26 }
 0x240   : > { %1216 = vrot.lane.b32.xlu1 %v2185_v3, %s1830_s26  ;;  %1214 = vrot.lane.b32.xlu0 %v2183_v17, %s1830_s26 }
 0x244   : > { %1248 = vrot.lane.b32.xlu1 %v2185_v3, %s1829_s24  ;;  %1246 = vrot.lane.b32.xlu0 %v2183_v17, %s1829_s24 }
 0x248   : > { %1252 = vrot.lane.b32.xlu1 %v2179_v16, %s1829_s24  ;;  %1250 = vrot.lane.b32.xlu0 %v2177_v15, %s1829_s24 }
 0x29e   : > { %v1243_v19 = vpop.permute.xlu0 %1242  ;;  %v1211_v21 = vpop.permute.xlu1 %1210 }
 0x29f   : > { %v1232_v29 = vadd.f32 %v2157_v20, %v1211_v21 }
 0x2a1   : > { %v1264_v33 = vadd.f32 %v1243_v19, %v1232_v29 }
 0x2a2   : > { %v1207_v22 = vpop.permute.xlu0 %1206  ;;  %v1213_v23 = vpop.permute.xlu1 %1212 }
 0x2a3   : > { %v1233_v28 = vadd.f32 %v2164_v63, %v1213_v23  ;;  %v1230_v37 = vadd.f32 %v2162_v62, %v1207_v22 }
 0x2a6   : > { %v1239_v31 = vpop.permute.xlu0 %1238  ;;  %v1245_v32 = vpop.permute.xlu1 %1244 }
 0x2a7   : > { %v1265_v35 = vadd.f32 %v1245_v32, %v1233_v28  ;;  %v1262_v8 = vadd.f32 %v1239_v31, %v1230_v37 }
 0x2a9   : > { %v1711_v5 = vpack.i.bf16 %v1265_v35, %v1264_v33 }
 0x2aa   : > { %v1241_v30 = vpop.permute.xlu1 %1240  ;;  %v1209_v25 = vpop.permute.xlu0 %1208 }
 0x2ab   : > { %v1231_v39 = vadd.f32 %v2172_v2, %v1209_v25  ;;  %1712 = vrot.lane.b32.xlu1 %v1711_v5, %s1831_s27 }
 0x2ad   : > { %v1263_v40 = vadd.f32 %v1241_v30, %v1231_v39 }
 0x2ae   : > { %v1221_v27 = vpop.permute.xlu1 %1220  ;;  %v1219_v18 = vpop.permute.xlu0 %1218 }
 0x2af   : > { %v1716_v41 = vpack.i.bf16 %v1263_v40, %v1262_v8  ;;  %v1237_v4 = vadd.f32 %v2179_v16, %v1221_v27  ;;  %v1236_v46 = vadd.f32 %v2177_v15, %v1219_v18 }
 0x2b1   : > { %1717 = vrot.lane.b32.xlu0 %v1716_v41, %s1831_s27 }
 0x2b2   : > { %v1217_v43 = vpop.permute.xlu1 %1216  ;;  %v1215_v24 = vpop.permute.xlu0 %1214 }
 0x2b3   : > { %v1235_v45 = vadd.f32 %v2185_v3, %v1217_v43  ;;  %v1234_v44 = vadd.f32 %v2183_v17, %v1215_v24 }
 0x2b6   : > { %v1249_v12 = vpop.permute.xlu1 %1248  ;;  %v1247_v26 = vpop.permute.xlu0 %1246 }
 0x2b7   : > { %v1267_v36 = vadd.f32 %v1249_v12, %v1235_v45  ;;  %v1266_v34 = vadd.f32 %v1247_v26, %v1234_v44 }
 0x2b9   : > { %v1721_v6 = vpack.i.bf16 %v1267_v36, %v1266_v34 }
 0x2ba   : > { %v1253_v38 = vpop.permute.xlu1 %1252  ;;  %v1251_v47 = vpop.permute.xlu0 %1250 }
 0x2bb   : > { %v1269_v42 = vadd.f32 %v1253_v38, %v1237_v4  ;;  %v1268_v48 = vadd.f32 %v1251_v47, %v1236_v46  ;;  %1722 = vrot.lane.b32.xlu0 %v1721_v6, %s1831_s27 }
 0x2bd   : > { %v1726_v7 = vpack.i.bf16 %v1269_v42, %v1268_v48 }
 0x2bf   : > { %1727 = vrot.lane.b32.xlu1 %v1726_v7, %s1831_s27 }
 0x31d   : > { %v1713_v11 = vpop.permute.xlu1 %1712 }
 0x31e   : > { %v1715_v9 = vunpack.i.h.bf16 %v1713_v11  ;;  %v1714_v10 = vunpack.i.l.bf16 %v1713_v11 }
 0x320   : > { %v1305_v52 = vsel %vm535_vm1, %v2164_v63, %v1715_v9  ;;  %v1304_v53 = vsel %vm535_vm1, %v2157_v20, %v1714_v10 }
 0x321   : > { %v1511_v58 = vpack.c.bf16 %v1305_v52, %v1305_v52  ;;  %v1510_v14 = vpack.c.bf16 %v1304_v53, %v1304_v53 }
 0x323   : > { %v1718_v49 = vpop.permute.xlu0 %1717  ;;  %1346 = vst.msk [vmem:[%s258_s7 + $0xc] sm:$0xf] %vm1342_vm8, %v1511_v58  ;;  %1345 = vst.msk [vmem:[%s258_s7 + $0x8] sm:$0xf] %vm1342_vm8, %v1510_v14 }
 0x324   : > { %v1720_v50 = vunpack.i.h.bf16 %v1718_v49  ;;  %v1719_v51 = vunpack.i.l.bf16 %v1718_v49 }
 0x326   : > { %v1303_v54 = vsel %vm535_vm1, %v2172_v2, %v1720_v50  ;;  %v1302_v55 = vsel %vm535_vm1, %v2162_v62, %v1719_v51 }
 0x327   : > { %v1509_v56 = vpack.c.bf16 %v1303_v54, %v1303_v54  ;;  %v1508_v57 = vpack.c.bf16 %v1302_v55, %v1302_v55 }
 0x329   : > { %1344 = vst.msk [vmem:[%s258_s7 + $0x4] sm:$0xf] %vm1342_vm8, %v1509_v56  ;;  %1343 = vst.msk [vmem:[%s258_s7] sm:$0xf] %vm1342_vm8, %v1508_v57 }
 0x32d   : > { %v1723_v20 = vpop.permute.xlu0 %1722 }
 0x32e   : > { %v1725_v59 = vunpack.i.h.bf16 %v1723_v20  ;;  %v1724_v60 = vunpack.i.l.bf16 %v1723_v20 }
 0x330   : > { %v1307_v13 = vsel %vm535_vm1, %v2185_v3, %v1725_v59  ;;  %v1306_v61 = vsel %vm535_vm1, %v2183_v17, %v1724_v60 }
 0x331   : > { %v1513_v62 = vpack.c.bf16 %v1307_v13, %v1307_v13  ;;  %v1512_v63 = vpack.c.bf16 %v1306_v61, %v1306_v61  ;;  %v1728_v0 = vpop.permute.xlu1 %1727 }
 0x332   : > { %v1730_v1 = vunpack.i.h.bf16 %v1728_v0  ;;  %v1729_v2 = vunpack.i.l.bf16 %v1728_v0 }
 0x333   : > { %1347 = vst.msk [vmem:[%s258_s7 + $0x10] sm:$0xf] %vm1342_vm8, %v1512_v63  ;;  %1348 = vst.msk [vmem:[%s258_s7 + $0x14] sm:$0xf] %vm1342_vm8, %v1513_v62 }
 0x334   : > { %v1309_v19 = vsel %vm535_vm1, %v2179_v16, %v1730_v1  ;;  %v1308_v21 = vsel %vm535_vm1, %v2177_v15, %v1729_v2 }
 0x335   : > { %v1515_v22 = vpack.c.bf16 %v1309_v19, %v1309_v19  ;;  %v1514_v3 = vpack.c.bf16 %v1308_v21, %v1308_v21 }
 0x337   : > { %1349 = vst.msk [vmem:[%s258_s7 + $0x18] sm:$0xf] %vm1342_vm8, %v1514_v3  ;;  %1350 = vst.msk [vmem:[%s258_s7 + $0x1c] sm:$0xf] %vm1342_vm8, %v1515_v22 }
 0x338 PF: > { %s16_s21 = sadd.s32 1, %s1827_s21  }
 0x339   : > { %p13_p4 = scmp.ge.s32.totalorder %s16_s21, 4  }
 0x33b   :  { %15 = sbr.rel (!%p13_p4) target bundleno = 1 (0x1), region = 78 }

</bundles_post_ra>
